<compile_context>
chip_gen: v5e
topology: v5e:2x2
jax: 0.10.0
libtpu: 0.0.40
codegen_flags: <defaults>
</compile_context>

<pallas_src>
import functools

import jax
import jax.numpy as jnp
from jax.experimental import pallas as pl
from jax.experimental.pallas import tpu as pltpu

LN_EPS = 1e-5   # nn.LayerNorm default
LANE = 128      # TPU lane width


def _round_up(n, m):
    return ((n + m - 1) // m) * m


def _vmem_capacity_bytes():
    """Per-core VMEM capacity; conservative 64 MiB (v7x) fallback."""
    try:
        info = pltpu.get_tpu_info()
        cap = getattr(info, "vmem_capacity_bytes", None)
        if cap:
            return int(cap)
    except Exception:
        pass
    return 64 * 1024 * 1024


def _resident_spec(shape):
    """BlockSpec for a grid-invariant operand; single-buffered if supported."""
    idx = lambda i: (0,) * len(shape)
    if hasattr(pl, "Buffered"):
        try:
            return pl.BlockSpec(shape, idx, pipeline_mode=pl.Buffered(1))
        except TypeError:
            pass
    return pl.BlockSpec(shape, idx)


def _pick_hid_slab(d_hid_p, max_slab):
    """Largest multiple-of-128 divisor of d_hid_p that is <= max_slab."""
    max_slab = max(LANE, (max_slab // LANE) * LANE)
    if d_hid_p <= max_slab:
        return d_hid_p
    n = -(-d_hid_p // max_slab)
    while d_hid_p % n != 0 or (d_hid_p // n) % LANE != 0:
        n += 1
    return d_hid_p // n


def _vmem_bytes(tm, d_in_p, d_hid_p, hid_slab):
    weights = 2 * d_in_p * d_hid_p * 2            # W1 + W2 bf16, single-buffered
    params = (d_hid_p + 3 * d_in_p) * 4           # b1, b2, gamma, beta f32
    x_tile = 2 * tm * d_in_p * 2                  # bf16 input, double-buffered
    o_tile = 2 * tm * d_in_p * 4                  # f32 output, double-buffered
    hidden = tm * hid_slab * (4 + 2)              # f32 hidden + bf16 cast copy
    interm = 5 * tm * d_in_p * 4                  # y/z/zc/acc/out temporaries
    return weights + params + x_tile + o_tile + hidden + interm


def _choose_tm(rows, d_in_p, d_hid_p, hid_slab, budget):
    tm = 128
    for cand in (1024, 512, 256, 128):
        if _vmem_bytes(cand, d_in_p, d_hid_p, hid_slab) <= budget:
            tm = cand
            break
    # Guarantee >= 2 grid steps when the problem is big enough (megacore / v7x).
    while tm > 128 and (rows + tm - 1) // tm < 2 and rows > 128:
        tm //= 2
    # Do not exceed the (8-aligned) row count.
    tm = min(tm, max(8, _round_up(rows, 8)))
    return tm


def _ffn_kernel(x_ref, w1_ref, b1_ref, w2_ref, b2_ref, gamma_ref, beta_ref,
                o_ref, *, d_in, hid_slab):
    # Hoist parameter reads once per grid step.
    b2 = b2_ref[...]          # (1, Dp) f32
    gamma = gamma_ref[...]    # (1, Dp) f32
    beta = beta_ref[...]      # (1, Dp) f32

    x_bf = x_ref[...]                     # (tm, Dp) bf16 (matmul input)
    x = x_bf.astype(jnp.float32)          # f32 for residual / LayerNorm

    d_hid_p = w1_ref.shape[1]
    n_slabs = d_hid_p // hid_slab

    if n_slabs == 1:
        # w_1: Conv1d(d_in, d_hid, 1) == x @ W1 + b1 (bf16 MXU, f32 accumulate)
        h = jnp.dot(x_bf, w1_ref[...],
                    preferred_element_type=jnp.float32) + b1_ref[...]
        h = jnp.maximum(h, 0.0)           # ReLU
        # w_2: Conv1d(d_hid, d_in, 1) == h @ W2 + b2
        y = jnp.dot(h.astype(jnp.bfloat16), w2_ref[...],
                    preferred_element_type=jnp.float32) + b2
    else:
        # Hidden-dim blocked path: ReLU is elementwise over d_hid, so slabs of
        # W1 columns / W2 rows can be processed independently and accumulated
        # into a (tm, Dp) f32 accumulator, bounding peak VMEM for large d_hid.
        def body(k, acc):
            s = pl.multiple_of(k * hid_slab, hid_slab)
            hk = jnp.dot(x_bf, w1_ref[:, pl.ds(s, hid_slab)],
                         preferred_element_type=jnp.float32)
            hk = jnp.maximum(hk + b1_ref[:, pl.ds(s, hid_slab)], 0.0)
            return acc + jnp.dot(hk.astype(jnp.bfloat16),
                                 w2_ref[pl.ds(s, hid_slab), :],
                                 preferred_element_type=jnp.float32)
        y = jax.lax.fori_loop(0, n_slabs, body,
                              jnp.zeros(x.shape, jnp.float32)) + b2

    # TODO(synk): dropout is identity here (inference mode); training-mode
    # dropout would need pltpu.prng_seed / prng_random_bits masking.
    z = y + x                 # residual add (f32)

    # LayerNorm over the real d_in features. Padded lanes of z are exactly
    # zero (x cols, W2 cols and b2 were zero-padded), so the plain sum already
    # equals the sum over real lanes; only the variance needs masking.
    d_pad = z.shape[-1]
    inv_n = 1.0 / float(d_in)
    mean = jnp.sum(z, axis=-1, keepdims=True) * inv_n
    zc = z - mean
    if d_pad == d_in:
        var = jnp.sum(zc * zc, axis=-1, keepdims=True) * inv_n
    else:
        lane = jax.lax.broadcasted_iota(jnp.int32, z.shape, dimension=1)
        zc_m = jnp.where(lane < d_in, zc, 0.0)
        var = jnp.sum(zc_m * zc_m, axis=-1, keepdims=True) * inv_n
    inv = jax.lax.rsqrt(var + LN_EPS)
    o_ref[...] = (zc * inv * gamma + beta).astype(o_ref.dtype)


def positionwise_feed_forward(x, w1, b1, w2, b2, gamma, beta, *,
                              tm=None, hidden_block=2048):
    """x: (B, L, d_in) float32. w1: (d_in, d_hid), w2: (d_hid, d_in).

    Returns (B, L, d_in) float32, equivalent to the PyTorch module in eval
    mode (dropout = identity). Matmuls use bf16 inputs / f32 accumulation.
    """
    B, L, d_in = x.shape
    d_hid = w1.shape[1]
    rows = B * L

    # Lane-dense feature padding (output stores stay unmasked full vregs).
    d_in_p = _round_up(d_in, LANE)
    d_hid_p = _round_up(d_hid, LANE)

    hid_slab = _pick_hid_slab(d_hid_p, hidden_block)

    vmem_cap = _vmem_capacity_bytes()
    budget = int(vmem_cap * 0.80)
    if tm is None:
        tm = _choose_tm(rows, d_in_p, d_hid_p, hid_slab, budget)
    need = _vmem_bytes(tm, d_in_p, d_hid_p, hid_slab)
    vmem_limit = min(int(vmem_cap * 0.85),
                     max(32 * 1024 * 1024, int(need * 1.5) + 8 * 1024 * 1024))

    # bf16 input tiles (half the HBM read traffic); features zero-padded so the
    # LayerNorm mean over padded lanes stays exact. No row padding: the grid
    # uses ceil-div and Pallas masks the ragged last block's store.
    x2d = x.reshape(rows, d_in)
    if d_in_p != d_in:
        x2d = jnp.pad(x2d, ((0, 0), (0, d_in_p - d_in)))
    x2d = x2d.astype(jnp.bfloat16)

    w1_p = jnp.pad(w1, ((0, d_in_p - d_in), (0, d_hid_p - d_hid))).astype(jnp.bfloat16)
    w2_p = jnp.pad(w2, ((0, d_hid_p - d_hid), (0, d_in_p - d_in))).astype(jnp.bfloat16)
    b1_p = jnp.pad(b1, (0, d_hid_p - d_hid)).reshape(1, d_hid_p).astype(jnp.float32)
    b2_p = jnp.pad(b2, (0, d_in_p - d_in)).reshape(1, d_in_p).astype(jnp.float32)
    gamma_p = jnp.pad(gamma, (0, d_in_p - d_in)).reshape(1, d_in_p).astype(jnp.float32)
    beta_p = jnp.pad(beta, (0, d_in_p - d_in)).reshape(1, d_in_p).astype(jnp.float32)

    grid = (pl.cdiv(rows, tm),)
    kernel = functools.partial(_ffn_kernel, d_in=d_in, hid_slab=hid_slab)

    # Advisory cost estimate for XLA scheduling around the custom call.
    try:
        cost = pl.CostEstimate(
            flops=4 * rows * d_in_p * d_hid_p,
            transcendentals=rows,
            bytes_accessed=(rows * d_in_p * 2 + rows * d_in_p * 4
                            + 2 * d_in_p * d_hid_p * 2
                            + (d_hid_p + 3 * d_in_p) * 4))
    except Exception:
        cost = None

    out = pl.pallas_call(
        kernel,
        out_shape=jax.ShapeDtypeStruct((rows, d_in_p), jnp.float32),
        grid_spec=pltpu.PrefetchScalarGridSpec(
            num_scalar_prefetch=0,
            grid=grid,
            in_specs=[
                pl.BlockSpec((tm, d_in_p), lambda i: (i, 0)),   # x rows tile (bf16)
                _resident_spec((d_in_p, d_hid_p)),              # W1 (resident)
                _resident_spec((1, d_hid_p)),                   # b1
                _resident_spec((d_hid_p, d_in_p)),              # W2 (resident)
                _resident_spec((1, d_in_p)),                    # b2
                _resident_spec((1, d_in_p)),                    # gamma
                _resident_spec((1, d_in_p)),                    # beta
            ],
            out_specs=pl.BlockSpec((tm, d_in_p), lambda i: (i, 0)),
        ),
        compiler_params=pltpu.CompilerParams(
            dimension_semantics=("parallel",),
            vmem_limit_bytes=vmem_limit,
        ),
        cost_estimate=cost,
    )(x2d, w1_p, b1_p, w2_p, b2_p, gamma_p, beta_p)

    if d_in_p != d_in:
        out = out[:, :d_in]
    return out.reshape(B, L, d_in)


def _reference(x, w1, b1, w2, b2, gamma, beta):
    # Pure-JAX f32 reference matching the PyTorch forward (eval mode).
    h = jnp.maximum(jnp.einsum("bld,dh->blh", x, w1) + b1, 0.0)
    y = jnp.einsum("blh,hd->bld", h, w2) + b2
    z = y + x
    mean = jnp.mean(z, axis=-1, keepdims=True)
    var = jnp.mean((z - mean) ** 2, axis=-1, keepdims=True)
    return (z - mean) / jnp.sqrt(var + LN_EPS) * gamma + beta


def _run_case(key, B, L, d_in, d_hid, **kw):
    kx, k1, kb1, k2, kb2, kg, kb = jax.random.split(key, 7)
    x = jax.random.normal(kx, (B, L, d_in), dtype=jnp.float32)
    # Conv1d(d_in, d_hid, 1) weight is (d_hid, d_in, 1); we store the
    # equivalent matmul form (d_in, d_hid) directly.
    w1 = jax.random.normal(k1, (d_in, d_hid), dtype=jnp.float32) / jnp.sqrt(d_in)
    b1 = jax.random.normal(kb1, (d_hid,), dtype=jnp.float32) * 0.01
    w2 = jax.random.normal(k2, (d_hid, d_in), dtype=jnp.float32) / jnp.sqrt(d_hid)
    b2 = jax.random.normal(kb2, (d_in,), dtype=jnp.float32) * 0.01
    gamma = jnp.ones((d_in,), dtype=jnp.float32) + 0.05 * jax.random.normal(kg, (d_in,))
    beta = 0.05 * jax.random.normal(kb, (d_in,), dtype=jnp.float32)

    out = positionwise_feed_forward(x, w1, b1, w2, b2, gamma, beta, **kw)
    out = jax.block_until_ready(out)

    ref = _reference(x, w1, b1, w2, b2, gamma, beta)
    assert out.shape == (B, L, d_in)
    # bf16 matmul inputs + bf16-quantized residual -> loosened tolerance.
    assert jnp.allclose(out, ref, atol=4e-2, rtol=4e-2), (
        f"mismatch vs reference: max abs err "
        f"{float(jnp.max(jnp.abs(out - ref)))}")


if __name__ == "__main__":
    key = jax.random.PRNGKey(0)
    k_a, k_b, k_c = jax.random.split(key, 3)

    # Toy, non-lane-aligned shape (feature padding + masked LN + tiny row tile).
    _run_case(k_a, B=2, L=8, d_in=32, d_hid=64)
    # Lane-dense shape with a multi-step row grid (fast path, single hidden slab).
    _run_case(k_b, B=4, L=128, d_in=128, d_hid=256)
    # Force the hidden-dim-blocked fori_loop path at small shapes.
    _run_case(k_c, B=2, L=64, d_in=128, d_hid=256, hidden_block=128)

    print("KERNEL_OK")
</pallas_src>

<mosaic_0001>
module attributes {stable_mosaic.version = 11 : i64} {
  func.func @_ffn_kernel(%arg0: i32, %arg1: memref<16x128xbf16, #tpu.memory_space<vmem>>, %arg2: memref<128x128xbf16, #tpu.memory_space<vmem>>, %arg3: memref<1x128xf32, #tpu.memory_space<vmem>>, %arg4: memref<128x128xbf16, #tpu.memory_space<vmem>>, %arg5: memref<1x128xf32, #tpu.memory_space<vmem>>, %arg6: memref<1x128xf32, #tpu.memory_space<vmem>>, %arg7: memref<1x128xf32, #tpu.memory_space<vmem>>, %arg8: memref<16x128xf32, #tpu.memory_space<vmem>>) attributes {dimension_semantics = [#tpu.dimension_semantics<parallel>], iteration_bounds = array<i64: 1>, scalar_prefetch = 0 : i64, scratch_operands = 0 : i64, tpu.core_type = #tpu.core_type<tc>, window_params = [{transform_indices = @transform_0, window_bounds = array<i64: 16, 128>}, {pipeline_mode = #tpu.pipeline_mode<synchronous>, transform_indices = @transform_1, window_bounds = array<i64: 128, 128>}, {pipeline_mode = #tpu.pipeline_mode<synchronous>, transform_indices = @transform_2, window_bounds = array<i64: 1, 128>}, {pipeline_mode = #tpu.pipeline_mode<synchronous>, transform_indices = @transform_3, window_bounds = array<i64: 128, 128>}, {pipeline_mode = #tpu.pipeline_mode<synchronous>, transform_indices = @transform_4, window_bounds = array<i64: 1, 128>}, {pipeline_mode = #tpu.pipeline_mode<synchronous>, transform_indices = @transform_5, window_bounds = array<i64: 1, 128>}, {pipeline_mode = #tpu.pipeline_mode<synchronous>, transform_indices = @transform_6, window_bounds = array<i64: 1, 128>}, {transform_indices = @transform_7, window_bounds = array<i64: 16, 128>}]} {
    %c0 = arith.constant 0 : index
    %c0_0 = arith.constant 0 : index
    %0 = vector.load %arg5[%c0, %c0_0] : memref<1x128xf32, #tpu.memory_space<vmem>>, vector<1x128xf32>
    %c0_1 = arith.constant 0 : index
    %c0_2 = arith.constant 0 : index
    %1 = vector.load %arg6[%c0_1, %c0_2] : memref<1x128xf32, #tpu.memory_space<vmem>>, vector<1x128xf32>
    %c0_3 = arith.constant 0 : index
    %c0_4 = arith.constant 0 : index
    %2 = vector.load %arg7[%c0_3, %c0_4] : memref<1x128xf32, #tpu.memory_space<vmem>>, vector<1x128xf32>
    %c0_5 = arith.constant 0 : index
    %c0_6 = arith.constant 0 : index
    %3 = vector.load %arg1[%c0_5, %c0_6] : memref<16x128xbf16, #tpu.memory_space<vmem>>, vector<16x128xbf16>
    %4 = arith.extf %3 : vector<16x128xbf16> to vector<16x128xf32>
    %c0_7 = arith.constant 0 : index
    %c0_8 = arith.constant 0 : index
    %5 = vector.load %arg2[%c0_7, %c0_8] : memref<128x128xbf16, #tpu.memory_space<vmem>>, vector<128x128xbf16>
    %cst = arith.constant dense<0.000000e+00> : vector<16x128xf32>
    %6 = tpu.matmul %3, %5, %cst {dimension_numbers = #tpu.dot_dimension_numbers<[1], [0], [0], [1], [0, 0, 1, 1], [], []>} : vector<16x128xbf16>, vector<128x128xbf16>, vector<16x128xf32> -> vector<16x128xf32>
    %c0_9 = arith.constant 0 : index
    %c0_10 = arith.constant 0 : index
    %7 = vector.load %arg3[%c0_9, %c0_10] : memref<1x128xf32, #tpu.memory_space<vmem>>, vector<1x128xf32>
    %8 = vector.broadcast %7 : vector<1x128xf32> to vector<16x128xf32>
    %9 = arith.addf %6, %8 : vector<16x128xf32>
    %cst_11 = arith.constant 0.000000e+00 : f32
    %10 = vector.broadcast %cst_11 : f32 to vector<16x128xf32>
    %11 = arith.maximumf %9, %10 : vector<16x128xf32>
    %12 = arith.truncf %11 : vector<16x128xf32> to vector<16x128xbf16>
    %c0_12 = arith.constant 0 : index
    %c0_13 = arith.constant 0 : index
    %13 = vector.load %arg4[%c0_12, %c0_13] : memref<128x128xbf16, #tpu.memory_space<vmem>>, vector<128x128xbf16>
    %cst_14 = arith.constant dense<0.000000e+00> : vector<16x128xf32>
    %14 = tpu.matmul %12, %13, %cst_14 {dimension_numbers = #tpu.dot_dimension_numbers<[1], [0], [0], [1], [0, 0, 1, 1], [], []>} : vector<16x128xbf16>, vector<128x128xbf16>, vector<16x128xf32> -> vector<16x128xf32>
    %15 = vector.broadcast %0 : vector<1x128xf32> to vector<16x128xf32>
    %16 = arith.addf %14, %15 : vector<16x128xf32>
    %17 = arith.addf %16, %4 : vector<16x128xf32>
    %cst_15 = arith.constant dense<0.000000e+00> : vector<16xf32>
    %18 = vector.multi_reduction <add>, %17, %cst_15 [1] : vector<16x128xf32> to vector<16xf32>
    %19 = vector.shape_cast %18 : vector<16xf32> to vector<16x1xf32>
    %cst_16 = arith.constant 3.125000e-02 : f32
    %20 = vector.broadcast %cst_16 : f32 to vector<16x1xf32>
    %21 = arith.mulf %19, %20 : vector<16x1xf32>
    %22 = vector.broadcast %21 : vector<16x1xf32> to vector<16x128xf32>
    %23 = arith.subf %17, %22 : vector<16x128xf32>
    %24 = tpu.iota {dimensions = array<i32: 1>} : vector<16x128xi32>
    %c32_i32 = arith.constant 32 : i32
    %25 = vector.broadcast %c32_i32 : i32 to vector<16x128xi32>
    %26 = arith.cmpi slt, %24, %25 : vector<16x128xi32>
    %cst_17 = arith.constant 0.000000e+00 : f32
    %27 = vector.broadcast %cst_17 : f32 to vector<16x128xf32>
    %28 = arith.select %26, %23, %27 : vector<16x128xi1>, vector<16x128xf32>
    %29 = arith.mulf %28, %28 : vector<16x128xf32>
    %cst_18 = arith.constant dense<0.000000e+00> : vector<16xf32>
    %30 = vector.multi_reduction <add>, %29, %cst_18 [1] : vector<16x128xf32> to vector<16xf32>
    %31 = vector.shape_cast %30 : vector<16xf32> to vector<16x1xf32>
    %cst_19 = arith.constant 3.125000e-02 : f32
    %32 = vector.broadcast %cst_19 : f32 to vector<16x1xf32>
    %33 = arith.mulf %31, %32 : vector<16x1xf32>
    %cst_20 = arith.constant 9.99999974E-6 : f32
    %34 = vector.broadcast %cst_20 : f32 to vector<16x1xf32>
    %35 = arith.addf %33, %34 : vector<16x1xf32>
    %36 = math.rsqrt %35 : vector<16x1xf32>
    %37 = vector.broadcast %36 : vector<16x1xf32> to vector<16x128xf32>
    %38 = arith.mulf %23, %37 : vector<16x128xf32>
    %39 = vector.broadcast %1 : vector<1x128xf32> to vector<16x128xf32>
    %40 = arith.mulf %38, %39 : vector<16x128xf32>
    %41 = vector.broadcast %2 : vector<1x128xf32> to vector<16x128xf32>
    %42 = arith.addf %40, %41 : vector<16x128xf32>
    %c0_21 = arith.constant 0 : index
    %c0_22 = arith.constant 0 : index
    %43 = vector.load %arg8[%c0_21, %c0_22] : memref<16x128xf32, #tpu.memory_space<vmem>>, vector<16x128xf32>
    tpu.vector_store %arg8[%c0_21, %c0_22], %42 {strides = array<i32>} : memref<16x128xf32, #tpu.memory_space<vmem>>, vector<16x128xf32>,
    return
  }
  func.func @transform_0(%arg0: i32) -> (i32, i32) {
    %c0_i32 = arith.constant 0 : i32
    %c0_i32_0 = arith.constant 0 : i32
    return %arg0, %c0_i32 : i32, i32
  }
  func.func @transform_1(%arg0: i32) -> (i32, i32) {
    %c0_i32 = arith.constant 0 : i32
    %c0_i32_0 = arith.constant 0 : i32
    %c0_i32_1 = arith.constant 0 : i32
    return %c0_i32, %c0_i32_0 : i32, i32
  }
  func.func @transform_2(%arg0: i32) -> (i32, i32) {
    %c0_i32 = arith.constant 0 : i32
    %c0_i32_0 = arith.constant 0 : i32
    %c0_i32_1 = arith.constant 0 : i32
    return %c0_i32, %c0_i32_0 : i32, i32
  }
  func.func @transform_3(%arg0: i32) -> (i32, i32) {
    %c0_i32 = arith.constant 0 : i32
    %c0_i32_0 = arith.constant 0 : i32
    %c0_i32_1 = arith.constant 0 : i32
    return %c0_i32, %c0_i32_0 : i32, i32
  }
  func.func @transform_4(%arg0: i32) -> (i32, i32) {
    %c0_i32 = arith.constant 0 : i32
    %c0_i32_0 = arith.constant 0 : i32
    %c0_i32_1 = arith.constant 0 : i32
    return %c0_i32, %c0_i32_0 : i32, i32
  }
  func.func @transform_5(%arg0: i32) -> (i32, i32) {
    %c0_i32 = arith.constant 0 : i32
    %c0_i32_0 = arith.constant 0 : i32
    %c0_i32_1 = arith.constant 0 : i32
    return %c0_i32, %c0_i32_0 : i32, i32
  }
  func.func @transform_6(%arg0: i32) -> (i32, i32) {
    %c0_i32 = arith.constant 0 : i32
    %c0_i32_0 = arith.constant 0 : i32
    %c0_i32_1 = arith.constant 0 : i32
    return %c0_i32, %c0_i32_0 : i32, i32
  }
  func.func @transform_7(%arg0: i32) -> (i32, i32) {
    %c0_i32 = arith.constant 0 : i32
    %c0_i32_0 = arith.constant 0 : i32
    return %arg0, %c0_i32 : i32, i32
  }
}

</mosaic_0001>

<bundles_post_ra>
// kernel: tpu_custom_call.1
= control target key start
LH: loop header
LB: loop body
LE: loop exit
PB: predicated region body
PF: predicated region fallthrough
CT: control target
= control target key end

     0   :  { %12 = vsyncpa [#allocation3], 0  ;;  %s607_s0 = inlined_call_operand.hbm [shape: bf16[16,128], index: 0, kind: input, shape index: {}]   ;;  %s608_s1 = inlined_call_operand.hbm [shape: bf16[128,128], index: 1, kind: input, shape index: {}]   ;;  %s609_s2 = inlined_call_operand.vmem [shape: f32[1,128], index: 2, kind: input, shape index: {}]   ;;  %s610_s3 = inlined_call_operand.hbm [shape: bf16[128,128], index: 3, kind: input, shape index: {}]   ;;  %s611_s4 = inlined_call_operand.vmem [shape: f32[1,128], index: 4, kind: input, shape index: {}]   ;;  %s612_s5 = inlined_call_operand.vmem [shape: f32[1,128], index: 5, kind: input, shape index: {}]   ;;  %s613_s6 = inlined_call_operand.vmem [shape: f32[1,128], index: 6, kind: input, shape index: {}]   ;;  %s614_s7 = inlined_call_operand.hbm [shape: f32[16,128], index: 7, kind: output, shape index: {}]  }
   0x1   :  { %13 = vsyncpa [#allocation6], 0 }
   0x2   :  { %14 = vsyncpa [#allocation4], 0  ;;  %s32_s26 = sshll.u32 %s608_s1, 4  ;;  %s535_s27 = smov [#allocation5]   ;;  %s33_s26 = int_to_ptr.hbm [resolvable:$true] %s32_s26 }
   0x3   :  { %s34_s28 = sshll.u32 %s535_s27, 4  ;;  %s19_s8 = sshll.u32 %s607_s0, 4  ;;  %s35_s28 = int_to_ptr.vmem [resolvable:$true] %s34_s28  ;;  %s20_s8 = int_to_ptr.hbm [resolvable:$true] %s19_s8 }
   0x4   :  { %s536_s9 = smov 64   ;;  %s537_s10 = smov 4  }
   0x5   :  { %40 = dma.hbm_to_vmem [thread:$0]  %s33_s26, 1024, %s35_s28, [#allocation6], %s536_s9, %s536_s9, %s537_s10  }
   0x6   :  { %s538_s11 = smov [#allocation2]   ;;  %s47_s15 = sshll.u32 %s610_s3, 4  ;;  %s48_s15 = int_to_ptr.hbm [resolvable:$true] %s47_s15 }
   0x7   :  { %s21_s12 = sshll.u32 %s538_s11, 4  ;;  %s539_s1 = smov [#allocation7]   ;;  %s22_s12 = int_to_ptr.vmem [resolvable:$true] %s21_s12 }
   0x8   :  { %27 = dma.hbm_to_vmem [thread:$0]  %s20_s8, 128, %s22_s12, [#allocation3], %s536_s9, %s536_s9, %s537_s10  }
   0x9   :  { %s49_s16 = sshll.u32 %s539_s1, 4  ;;  %s50_s16 = int_to_ptr.vmem [resolvable:$true] %s49_s16 }
   0xa   :  { %55 = dma.hbm_to_vmem [thread:$0]  %s48_s15, 1024, %s50_s16, [#allocation6], %s536_s9, %s536_s9, %s537_s10  }
   0xb   :  { %529 = dma.done.wait [#allocation3], 128  }
   0xc   :  { %530 = vsyncadd [#allocation3], 4294967168 }
   0xd   :  { %531 = dma.done.wait [#allocation6], 2048  }
   0xe   :  { %532 = vsyncadd [#allocation6], 4294965248  ;;  %v408_v0 = vld [vmem:[#allocation5 + $0x38] sm:$0xff]  ;;  %v407_v1 = vld [vmem:[#allocation5 + $0x30] sm:$0xff]  ;;  %v263_v35 = vlaneseq  ;;  %s318_s24 = sshll.u32 %s614_s7, 4  ;;  %s542_s25 = smov 8   ;;  %s319_s24 = int_to_ptr.hbm [resolvable:$true] %s318_s24 }
   0xf   :  { %155 = vmatpush.bf16.msra.mxu0 %v408_v0  ;;  %v416_v2 = vld [vmem:[#allocation7 + $0x38] sm:$0xff]  ;;  %v415_v3 = vld [vmem:[#allocation7 + $0x30] sm:$0xff]  ;;  %v406_v4 = vld [vmem:[#allocation5 + $0x28] sm:$0xff] }
  0x10   :  { %239 = vmatpush.bf16.msra.mxu1 %v416_v2  ;;  %v414_v5 = vld [vmem:[#allocation7 + $0x28] sm:$0xff]  ;;  %v405_v6 = vld [vmem:[#allocation5 + $0x20] sm:$0xff]  ;;  %v404_v8 = vld [vmem:[#allocation5 + $0x18] sm:$0xff]  ;;  %v264_v36 = vand.u32 127, %v263_v35 }
  0x11   :  { %v413_v7 = vld [vmem:[#allocation7 + $0x20] sm:$0xff]  ;;  %v403_v9 = vld [vmem:[#allocation5 + $0x10] sm:$0xff]  ;;  %v402_v10 = vld [vmem:[#allocation5 + $0x8] sm:$0xff] }
  0x12   :  { %v401_v11 = vld [vmem:[#allocation5] sm:$0xff]  ;;  %v400_v12 = vld [vmem:[#allocation2] sm:$0xff]  ;;  %v411_v14 = vld [vmem:[#allocation7 + $0x10] sm:$0xff]  ;;  %vm265_vm0 = vcmp.lt.s32.totalorder %v264_v36, 32 }
  0x13   :  { %156 = vmatpush.bf16.msra.mxu0 %v407_v1  ;;  %v412_v13 = vld [vmem:[#allocation7 + $0x18] sm:$0xff]  ;;  %v410_v15 = vld [vmem:[#allocation7 + $0x8] sm:$0xff]  ;;  %v409_v16 = vld [vmem:[#allocation7] sm:$0xff] }
  0x14   :  { %240 = vmatpush.bf16.msra.mxu1 %v415_v3  ;;  %v425_v18 = vld [vmem:[%s609_s2] ss:$0 sm:$0xff] }
  0x15   :  { %v77_v25 = vld [vmem:[#allocation2] sm:$0xff]  }
  0x16   :  { %v426_v26 = vld [vmem:[%s611_s4] ss:$0 sm:$0xff]  ;;  %v79_v27 = vunpack.c.l.bf16 %v77_v25  ;;  %v80_v31 = vunpack.c.h.bf16 %v77_v25 }
  0x17   :  { %157 = vmatpush.bf16.msra.mxu0 %v406_v4  ;;  %v427_v61 = vld [vmem:[%s612_s5] ss:$0 sm:$0xff]  ;;  %s540_s5 = smov [#allocation8]  }
  0x18   :  { %241 = vmatpush.bf16.msra.mxu1 %v414_v5  ;;  %v428_v1 = vld [vmem:[%s613_s6] ss:$0 sm:$0xff]  ;;  %s316_s21 = sshll.u32 %s540_s5, 4  ;;  %s541_s6 = smov 128   ;;  %s317_s21 = int_to_ptr.vmem [resolvable:$true] %s316_s21 }
  0x1b   :  { %158 = vmatpush.bf16.msra.mxu0 %v405_v6 }
  0x1c   :  { %242 = vmatpush.bf16.msra.mxu1 %v413_v7 }
  0x1f   :  { %159 = vmatpush.bf16.msra.mxu0 %v404_v8 }
  0x20   :  { %243 = vmatpush.bf16.msra.mxu1 %v412_v13 }
  0x23   :  { %160 = vmatpush.bf16.msra.mxu0 %v403_v9 }
  0x24   :  { %244 = vmatpush.bf16.msra.mxu1 %v411_v14 }
  0x27   :  { %161 = vmatpush.bf16.msra.mxu0 %v402_v10 }
  0x28   :  { %245 = vmatpush.bf16.msra.mxu1 %v410_v15 }
  0x2b   :  { %162 = vmatpush.bf16.msra.mxu0 %v401_v11 }
  0x2c   :  { %246 = vmatpush.bf16.msra.mxu1 %v409_v16 }
  0x2e   :  { %163 = vmatmul.bf16.vlgmr.msra.gmra.mxu0 %v400_v12 }
  0xab   :  { %v164_v17 = vpop.f32.mrf.mxu0 }
  0xac   :  { %v165_v19 = vadd.f32 %v425_v18, %v164_v17 }
  0xae   :  { %v169_v22 = vmax.f32 %v165_v19, 0.0 }
  0xb3   :  { %v166_v20 = vpop.f32.mrf.mxu0 }
  0xb4   :  { %v167_v21 = vadd.f32 %v425_v18, %v166_v20 }
  0xb6   :  { %v170_v23 = vmax.f32 %v167_v21, 0.0 }
  0xb8   :  { %v171_v24 = vpack.c.bf16 %v170_v23, %v169_v22 }
  0xba   :  { %247 = vmatmul.bf16.vlgmr.msra.gmra.mxu1 %v171_v24 }
 0x137   :  { %v248_v28 = vpop.f32.mrf.mxu1 }
 0x138   :  { %v249_v29 = vadd.f32 %v426_v26, %v248_v28 }
 0x13a   :  { %v253_v30 = vadd.f32 %v249_v29, %v79_v27 }
 0x13c   :  { %255 = vadd.xlane.f32.xlu0 %v253_v30 }
 0x13f   :  { %v250_v32 = vpop.f32.mrf.mxu1 }
 0x140   :  { %v251_v33 = vadd.f32 %v426_v26, %v250_v32 }
 0x142   :  { %v254_v34 = vadd.f32 %v251_v33, %v80_v31 }
 0x144   :  { %257 = vadd.xlane.f32.xlu0 %v254_v34 }
 0x1af   :  { %v256_v37 = vpop.xlane.xlu0 %255 }
 0x1b0   :  { %v259_v38 = vmul.f32 0.03125, %v256_v37 }
 0x1b2   :  { %v261_v39 = vsub.f32 %v253_v30, %v259_v38 }
 0x1b4   :  { %v266_v40 = vsel %vm265_vm0, %v261_v39, 0.0 }
 0x1b5   :  { %v268_v41 = vmul.f32 %v266_v40, %v266_v40 }
 0x1b7   :  { %270 = vadd.xlane.f32.xlu1 %v268_v41  ;;  %v258_v42 = vpop.xlane.xlu0 %257 }
 0x1b8   :  { %v260_v43 = vmul.f32 0.03125, %v258_v42 }
 0x1ba   :  { %v262_v44 = vsub.f32 %v254_v34, %v260_v43 }
 0x1bc   :  { %v267_v45 = vsel %vm265_vm0, %v262_v44, 0.0 }
 0x1bd   :  { %v269_v46 = vmul.f32 %v267_v45, %v267_v45 }
 0x1bf   :  { %272 = vadd.xlane.f32.xlu1 %v269_v46 }
 0x22a   :  { %v271_v47 = vpop.xlane.xlu1 %270 }
 0x22b   :  { %v274_v48 = vmul.f32 0.03125, %v271_v47 }
 0x22d   :  { %v276_v49 = vadd.f32 1e-05, %v274_v48 }
 0x22f   :  { %429 = vrsqrt.f32 %v276_v49  ;;  %vm284_vm2 = vweird.f32 %v276_v49 }
 0x232   :  { %v273_v50 = vpop.xlane.xlu1 %272 }
 0x233   :  { %v275_v51 = vmul.f32 0.03125, %v273_v50 }
 0x235   :  { %v430_v52 = vpop.eup %429  ;;  %v277_v53 = vadd.f32 1e-05, %v275_v51 }
 0x236   :  { %v279_v54 = vmul.f32 %v430_v52, %v276_v49  ;;  %vm285_vm1 = vweird.f32 %v430_v52 }
 0x237   :  { %431 = vrsqrt.f32 %v277_v53  ;;  %vm286_vm3 = vmor %vm284_vm2, %vm285_vm1  ;;  %vm294_vm5 = vweird.f32 %v277_v53 }
 0x238   :  { %v280_v55 = vmul.f32 %v430_v52, %v279_v54 }
 0x23a   :  { %v281_v56 = vmul.f32 0.5, %v280_v55 }
 0x23c   :  { %v282_v57 = vsub.f32 1.5, %v281_v56 }
 0x23d   :  { %v432_v58 = vpop.eup %431 }
 0x23e   :  { %v283_v59 = vmul.f32 %v430_v52, %v282_v57  ;;  %v289_v60 = vmul.f32 %v432_v58, %v277_v53  ;;  %vm295_vm4 = vweird.f32 %v432_v58 }
 0x23f   :  { %vm296_vm6 = vmor %vm294_vm5, %vm295_vm4 }
 0x240   :  { %v287_v62 = vsel %vm286_vm3, %v430_v52, %v283_v59  ;;  %v290_v63 = vmul.f32 %v432_v58, %v289_v60 }
 0x241   :  { %v298_v0 = vmul.f32 %v287_v62, %v261_v39 }
 0x242   :  { %v291_v2 = vmul.f32 0.5, %v290_v63 }
 0x243   :  { %v303_v3 = vmul.f32 %v427_v61, %v298_v0 }
 0x244   :  { %v292_v4 = vsub.f32 1.5, %v291_v2 }
 0x245   :  { %v308_v5 = vadd.f32 %v428_v1, %v303_v3 }
 0x246   :  { %v293_v6 = vmul.f32 %v432_v58, %v292_v4 }
 0x247   :  { %310 = vst [vmem:[#allocation8] sm:$0xff] %v308_v5 }
 0x248   :  { %v297_v7 = vsel %vm296_vm6, %v432_v58, %v293_v6 }
 0x249   :  { %v299_v8 = vmul.f32 %v297_v7, %v262_v44 }
 0x24b   :  { %v304_v9 = vmul.f32 %v427_v61, %v299_v8 }
 0x24d   :  { %v309_v10 = vadd.f32 %v428_v1, %v304_v9 }
 0x24f   :  { %311 = vst [vmem:[#allocation8 + $0x8] sm:$0xff] %v309_v10 }
 0x250   :  { %324 = dma.vmem_to_hbm [thread:$0]  %s317_s21, 256, %s319_s24, [#allocation4], %s541_s6, %s541_s6, %s542_s25  }
 0x251   :  { %533 = dma.done.wait [#allocation4], 256  }
 0x252   :  { %534 = vsyncadd [#allocation4], 4294967040 }
 0x253   :  { %329 = vsyncpa [#allocation3], 1 }
 0x254   :  { %330 = vsyncpa [#allocation6], 1 }
 0x255   :  { %331 = vsyncpa [#allocation4], 1 }

</bundles_post_ra>
